<compile_context>
chip_gen: v7x
topology: tpu7x:2x2x1
jax: 0.10.0
libtpu: 0.0.40
codegen_flags: <defaults>
</compile_context>

<pallas_src>
import jax
import jax.numpy as jnp
from jax.experimental import pallas as pl
from jax.experimental.pallas import tpu as pltpu


def _linear3d_kernel(x_ref, w_ref, b_ref, o_ref):
    # x_ref: (B, S, K)   w_ref: (K, N)   b_ref: (1, N)   o_ref: (B, S, N)
    # Whole-array VMEM refs (no grid).  The static (tiny) batch dim is
    # unrolled in Python: each iteration is one (S, K) @ (K, N) MXU matmul
    # with f32 accumulation; Mosaic lowers this directly with no relayouts.
    w = w_ref[...]
    bias = b_ref[...]
    for b in range(x_ref.shape[0]):
        acc = jnp.dot(x_ref[b], w, preferred_element_type=jnp.float32)
        o_ref[b] = (acc + bias).astype(o_ref.dtype)


def pallas_linear3d(x, w, b):
    """y[b, s, :] = x[b, s, :] @ w + b — one un-gridded Pallas call."""
    B, S, K = x.shape
    K2, N = w.shape
    assert K == K2
    flops = 2 * B * S * K * N + B * S * N                  # matmul + bias add
    bytes_accessed = 4 * (x.size + w.size + b.size + B * S * N)
    return pl.pallas_call(
        _linear3d_kernel,
        out_shape=jax.ShapeDtypeStruct((B, S, N), jnp.float32),
        # No grid: whole arrays live in VMEM for the single invocation.
        in_specs=[
            pl.BlockSpec(memory_space=pltpu.MemorySpace.VMEM),  # x
            pl.BlockSpec(memory_space=pltpu.MemorySpace.VMEM),  # w
            pl.BlockSpec(memory_space=pltpu.MemorySpace.VMEM),  # bias
        ],
        out_specs=pl.BlockSpec(memory_space=pltpu.MemorySpace.VMEM),
        cost_estimate=pl.CostEstimate(
            flops=flops, transcendentals=0, bytes_accessed=bytes_accessed
        ),
    )(x, w, b)


class WrappedModel:
    """JAX/Pallas equivalent of the PyTorch WrappedModel: pure delegation."""

    def __init__(self, module):
        self.module = module

    def __call__(self, x):
        return self.module(x)


class PallasLinear:
    """Deterministic stand-in for the wrapped module (nn.Linear(32, 32))."""

    def __init__(self, in_features, out_features):
        # Deterministic init, nn.Linear shapes: weight (out, in), bias (out,).
        kw, kb = jax.random.split(jax.random.PRNGKey(42))
        bound = 1.0 / (in_features ** 0.5)
        weight = jax.random.uniform(
            kw, (out_features, in_features), jnp.float32, -bound, bound
        )
        bias = jax.random.uniform(kb, (out_features,), jnp.float32, -bound, bound)
        # Pre-transpose once at init so the kernel computes x @ W + b
        # (== x @ weight.T + b) with no per-call transpose.
        self.w = weight.T                         # (in, out)
        self.b = bias.reshape(1, out_features)    # (1, out)
        self.out_features = out_features

    def __call__(self, x):
        # x: (batch, seq, hidden) goes straight into the kernel; the output
        # comes back as (batch, seq, out) — no reshape glue around the call.
        return pallas_linear3d(x, self.w, self.b)


if __name__ == "__main__":
    batch, seq, hidden = 2, 8, 32
    x = jax.random.normal(jax.random.PRNGKey(0), (batch, seq, hidden), jnp.float32)

    inner = PallasLinear(hidden, hidden)
    model = WrappedModel(inner)

    y = model(x)
    y = jax.block_until_ready(y)

    # Sanity check against a plain-JAX reference of the same delegation.
    y_ref = jnp.matmul(x, inner.w) + inner.b
    assert y.shape == (batch, seq, hidden)
    assert jnp.allclose(y, y_ref, atol=1e-5, rtol=1e-5)

    print("KERNEL_OK")
</pallas_src>

<mosaic_0001>
module attributes {stable_mosaic.version = 11 : i64} {
  func.func @_linear3d_kernel(%arg0: memref<2x8x32xf32, #tpu.memory_space<vmem>>, %arg1: memref<32x32xf32, #tpu.memory_space<vmem>>, %arg2: memref<1x32xf32, #tpu.memory_space<vmem>>, %arg3: memref<2x8x32xf32, #tpu.memory_space<vmem>>) attributes {dimension_semantics = [], scalar_prefetch = 0 : i64, scratch_operands = 0 : i64, tpu.core_type = #tpu.core_type<tc>} {
    %c0 = arith.constant 0 : index
    %c0_0 = arith.constant 0 : index
    %0 = vector.load %arg1[%c0, %c0_0] : memref<32x32xf32, #tpu.memory_space<vmem>>, vector<32x32xf32>
    %c0_1 = arith.constant 0 : index
    %c0_2 = arith.constant 0 : index
    %1 = vector.load %arg2[%c0_1, %c0_2] : memref<1x32xf32, #tpu.memory_space<vmem>>, vector<1x32xf32>
    %c0_3 = arith.constant 0 : index
    %c0_4 = arith.constant 0 : index
    %c0_5 = arith.constant 0 : index
    %2 = vector.load %arg0[%c0_3, %c0_4, %c0_5] : memref<2x8x32xf32, #tpu.memory_space<vmem>>, vector<1x8x32xf32>
    %3 = vector.shape_cast %2 : vector<1x8x32xf32> to vector<8x32xf32>
    %cst = arith.constant dense<0.000000e+00> : vector<8x32xf32>
    %4 = tpu.matmul %3, %0, %cst {dimension_numbers = #tpu.dot_dimension_numbers<[1], [0], [0], [1], [0, 0, 1, 1], [], []>} : vector<8x32xf32>, vector<32x32xf32>, vector<8x32xf32> -> vector<8x32xf32>
    %5 = vector.broadcast %1 : vector<1x32xf32> to vector<8x32xf32>
    %6 = arith.addf %4, %5 : vector<8x32xf32>
    %c0_6 = arith.constant 0 : index
    %c0_7 = arith.constant 0 : index
    %c0_8 = arith.constant 0 : index
    %7 = vector.load %arg3[%c0_6, %c0_7, %c0_8] : memref<2x8x32xf32, #tpu.memory_space<vmem>>, vector<1x8x32xf32>
    %8 = vector.shape_cast %7 : vector<1x8x32xf32> to vector<8x32xf32>
    %9 = vector.shape_cast %6 : vector<8x32xf32> to vector<1x8x32xf32>
    tpu.vector_store %arg3[%c0_6, %c0_7, %c0_8], %9 {strides = array<i32>} : memref<2x8x32xf32, #tpu.memory_space<vmem>>, vector<1x8x32xf32>,
    %c1 = arith.constant 1 : index
    %c0_9 = arith.constant 0 : index
    %c0_10 = arith.constant 0 : index
    %10 = vector.load %arg0[%c1, %c0_9, %c0_10] : memref<2x8x32xf32, #tpu.memory_space<vmem>>, vector<1x8x32xf32>
    %11 = vector.shape_cast %10 : vector<1x8x32xf32> to vector<8x32xf32>
    %cst_11 = arith.constant dense<0.000000e+00> : vector<8x32xf32>
    %12 = tpu.matmul %11, %0, %cst_11 {dimension_numbers = #tpu.dot_dimension_numbers<[1], [0], [0], [1], [0, 0, 1, 1], [], []>} : vector<8x32xf32>, vector<32x32xf32>, vector<8x32xf32> -> vector<8x32xf32>
    %13 = vector.broadcast %1 : vector<1x32xf32> to vector<8x32xf32>
    %14 = arith.addf %12, %13 : vector<8x32xf32>
    %c1_12 = arith.constant 1 : index
    %c0_13 = arith.constant 0 : index
    %c0_14 = arith.constant 0 : index
    %15 = vector.load %arg3[%c1_12, %c0_13, %c0_14] : memref<2x8x32xf32, #tpu.memory_space<vmem>>, vector<1x8x32xf32>
    %16 = vector.shape_cast %15 : vector<1x8x32xf32> to vector<8x32xf32>
    %17 = vector.shape_cast %14 : vector<8x32xf32> to vector<1x8x32xf32>
    tpu.vector_store %arg3[%c1_12, %c0_13, %c0_14], %17 {strides = array<i32>} : memref<2x8x32xf32, #tpu.memory_space<vmem>>, vector<1x8x32xf32>,
    return
  }
}

</mosaic_0001>

<bundles_post_ra>
// kernel: tpu_custom_call.1
= control target key start
LH: loop header
LB: loop body
LE: loop exit
PB: predicated region body
PF: predicated region fallthrough
CT: control target
= control target key end

     0   :  { %8 = vsyncpa [#allocation3], 0  ;;  %s428_s0 = inlined_call_operand.hbm [shape: f32[2,8,32], index: 0, kind: input, shape index: {}]   ;;  %s429_s1 = inlined_call_operand.hbm [shape: f32[32,32], index: 1, kind: input, shape index: {}]   ;;  %s430_s2 = inlined_call_operand.vmem [shape: f32[1,32], index: 2, kind: input, shape index: {}]   ;;  %s431_s3 = inlined_call_operand.hbm [shape: f32[2,8,32], index: 3, kind: output, shape index: {}]  }
   0x1   :  { %9 = vsyncpa [#allocation6], 0 }
   0x2   :  { %10 = vsyncpa [#allocation4], 0  ;;  %s352_s12 = smov [#allocation2]   ;;  %s280_s16 = scalar_lea.hbm %s428_s0, 256 }
   0x3   :  { %s16_s13 = sshll.u32 %s352_s12, 4  ;;  %p281_p0 = scmp.ne.s32.totalorder %s428_s0, %s280_s16  ;;  %s17_s13 = int_to_ptr.vmem [resolvable:$true] %s16_s13 }
   0x4   :  { %p284_p1 = scmp.lt.u32.totalorder %s280_s16, %s428_s0 }
   0x6   :  { %p286_p2 = pnand %p284_p1, %p281_p0 }
   0x8   :  { %289 = shalt.err (!%p286_p2)
}
   0x9   :  { %s290_s21 = scalar_lea.vmem %s17_s13, 256  ;;  %p295_p4 = scmp.lt.s32.totalorder %s17_s13, %s17_s13 }
   0xa   :  { %p291_p3 = scmp.ne.s32.totalorder %s17_s13, %s290_s21  ;;  %p296_p5 = scmp.lt.s32.totalorder %s290_s21, %s290_s21 }
   0xc   :  { %p297_p6 = por %p296_p5, %p295_p4 }
   0xe   :  { %p298_p7 = pnand %p297_p6, %p291_p3 }
  0x10   :  { %301 = shalt.err (!%p298_p7)
}
  0x11   :  { %s353_s22 = smov 128   ;;  %s354_s23 = smov 8  }
  0x12   :  { %22 = dma.hbm_to_vmem [thread:$0]  %s428_s0, 256, %s17_s13, [#allocation3], %s353_s22, %s353_s22, %s354_s23  }
  0x13   :  { %s355_s26 = smov [#allocation5]   ;;  %s302_s30 = scalar_lea.hbm %s429_s1, 512 }
  0x14   :  { %s28_s27 = sshll.u32 %s355_s26, 4  ;;  %p303_p8 = scmp.ne.s32.totalorder %s429_s1, %s302_s30  ;;  %s29_s27 = int_to_ptr.vmem [resolvable:$true] %s28_s27 }
  0x15   :  { %p306_p9 = scmp.lt.u32.totalorder %s302_s30, %s429_s1 }
  0x17   :  { %p308_p10 = pnand %p306_p9, %p303_p8 }
  0x19   :  { %311 = shalt.err (!%p308_p10)
}
  0x1a   :  { %s312_s8 = scalar_lea.vmem %s29_s27, 512  ;;  %p317_p12 = scmp.lt.s32.totalorder %s29_s27, %s29_s27 }
  0x1b   :  { %p313_p11 = scmp.ne.s32.totalorder %s29_s27, %s312_s8  ;;  %p318_p13 = scmp.lt.s32.totalorder %s312_s8, %s312_s8 }
  0x1d   :  { %p319_p0 = por %p318_p13, %p317_p12 }
  0x1f   :  { %p320_p1 = pnand %p319_p0, %p313_p11 }
  0x21   :  { %323 = shalt.err (!%p320_p1)
}
  0x22   :  { %34 = dma.hbm_to_vmem [thread:$0]  %s429_s1, 512, %s29_s27, [#allocation6], %s353_s22, %s353_s22, %s354_s23  }
  0x23   :  { %346 = dma.done.wait [#allocation3], 256  }
  0x24   :  { %347 = vsyncadd [#allocation3], 4294967040 }
  0x25   :  { %348 = dma.done.wait [#allocation6], 512  }
  0x26   :  { %349 = vsyncadd [#allocation6], 4294966784  ;;  %v356_v0 = vmov 0.0|0.0   ;;  %vm357_vm0 = vmmov 0   ;;  %v358_v1 = vmov 0.0   ;;  %v43_v2 = vld [vmem:[#allocation5] sm:$0xff] }
  0x27   :  { %260 = vmatprep.subr.bf16.mxu0 %v356_v0  ;;  %266 = vmatprep.subr.bf16.mxu1 %v356_v0  ;;  %v44_v3 = vld [vmem:[#allocation5 + $0x8] sm:$0xff]  ;;  %v45_v4 = vld [vmem:[#allocation5 + $0x10] sm:$0xff]  ;;  %v46_v6 = vld [vmem:[#allocation5 + $0x18] sm:$0xff]  ;;  %vm55_vm1 = vcmask 261120   ;;  %s359_s11 = smov [#allocation7]  }
  0x28   :  { %246 = vmatprep.mubr.msk.f32.mxu0 %vm357_vm0, %v358_v1  ;;  %257 = vmatprep.mubr.msk.f32.mxu1 %vm357_vm0, %v358_v1  ;;  %v261_v5 = vpack.c.bf16 %v44_v3, %v43_v2  ;;  %v264_v7 = vpack.c.bf16 %v46_v6, %v45_v4  ;;  %v48_v8 = vld [vmem:[#allocation2] sm:$0xff]  ;;  %v131_v9 = vld [vmem:[#allocation2 + $0x8] sm:$0xff]  ;;  %s212_s12 = sshll.u32 %s359_s11, 4  ;;  %s213_s12 = int_to_ptr.vmem [resolvable:$true] %s212_s12 }
  0x29   :  { %v225_v10 = vld [vmem:[%s430_s2] ss:$0 sm:$0xff]  ;;  %s324_s13 = scalar_lea.vmem %s213_s12, 256  ;;  %p329_p3 = scmp.lt.s32.totalorder %s213_s12, %s213_s12 }
  0x2a   :  { %262 = vmatpush3.bf16.msra.mxu0 %v261_v5  ;;  %268 = vmatpush3.bf16.msra.mxu1 %v261_v5  ;;  %p325_p2 = scmp.ne.s32.totalorder %s213_s12, %s324_s13  ;;  %p330_p4 = scmp.lt.s32.totalorder %s324_s13, %s324_s13 }
  0x2b   :  { %263 = vmatprep.subr.bf16.mxu0 %v356_v0  ;;  %269 = vmatprep.subr.bf16.mxu1 %v356_v0 }
  0x2c   :  { %p331_p5 = por %p330_p4, %p329_p3 }
  0x2e   :  { %265 = vmatpush3.bf16.msra.mxu0 %v264_v7  ;;  %271 = vmatpush3.bf16.msra.mxu1 %v264_v7  ;;  %p332_p6 = pnand %p331_p5, %p325_p2 }
  0x31   :  { %247 = vmatmul.mubr.msk.f32.vlgmr.msra.gmra.mrb[0].mxu0 %vm55_vm1, %v48_v8  ;;  %258 = vmatmul.mubr.msk.f32.vlgmr.msra.gmra.mrb[0].mxu1 %vm55_vm1, %v131_v9 }
 0x104   :  { %v125_v11 = vpop.f32.mrb[0].mxu0  ;;  %v201_v12 = vpop.f32.mrb[0].mxu1 }
 0x105   :  { %v126_v13 = vadd.f32 %v225_v10, %v125_v11  ;;  %v202_v14 = vadd.f32 %v225_v10, %v201_v12  ;;  %v248_v15 = vpop.f32.mrb[1].mxu0  ;;  %v259_v16 = vpop.f32.mrb[1].mxu1 }
 0x107   :  { %129 = vst.msk [vmem:[#allocation7] sm:$0xff] %vm55_vm1, %v126_v13  ;;  %206 = vst.msk [vmem:[#allocation7 + $0x8] sm:$0xff] %vm55_vm1, %v202_v14 }
 0x108   :  { %335 = shalt.err (!%p332_p6)
}
 0x109   :  { %s336_s15 = scalar_lea.hbm %s431_s3, 256 }
 0x10a   :  { %p337_p7 = scmp.ne.s32.totalorder %s431_s3, %s336_s15  ;;  %p340_p8 = scmp.lt.u32.totalorder %s336_s15, %s431_s3 }
 0x10c   :  { %p342_p9 = pnand %p340_p8, %p337_p7 }
 0x10e   :  { %345 = shalt.err (!%p342_p9)
}
 0x10f   :  { %218 = dma.vmem_to_hbm [thread:$0]  %s213_s12, 256, %s431_s3, [#allocation4], %s353_s22, %s353_s22, %s354_s23  }
 0x110   :  { %350 = dma.done.wait [#allocation4], 256  }
 0x111   :  { %351 = vsyncadd [#allocation4], 4294967040 }
 0x112   :  { %222 = vsyncpa [#allocation3], 1 }
 0x113   :  { %223 = vsyncpa [#allocation6], 1 }
 0x114   :  { %224 = vsyncpa [#allocation4], 1 }

</bundles_post_ra>
